<compile_context>
chip_gen: v7x
topology: tpu7x:2x2x1
jax: 0.10.0
libtpu: 0.0.40
codegen_flags: <defaults>
</compile_context>

<pallas_src>
import jax
import jax.numpy as jnp
from jax.experimental import pallas as pl
from jax.experimental.pallas import tpu as pltpu


def make_rotary_tables(dim: int, max_seq_len: int):
    """Deterministic parameter setup, identical to the PyTorch __init__."""
    assert dim % 4 == 0
    angular_freq = (1.0 / 1024.0) ** jnp.linspace(0.0, 1.0, num=dim // 4,
                                                  dtype=jnp.float32)
    angular_freq = jnp.concatenate(
        [angular_freq, jnp.zeros((dim // 4,), dtype=jnp.float32)])      # (dim//2,)
    t = jnp.arange(max_seq_len, dtype=jnp.float32)                      # (T_max,)
    theta = jnp.einsum("i,j->ij", t, angular_freq)                      # (T_max, dim//2)
    return jnp.cos(theta), jnp.sin(theta)


def _rotary_kernel(x_ref, cos_ref, sin_ref, o_ref):
    # x_ref   : (1, tT, H, D)  block (one batch element, one T-tile)
    # cos_ref : (tT, D)   full-width cos table      [cos | cos]
    # sin_ref : (tT, D)   sign-baked sin table      [sin | -sin]
    x = x_ref[...]                      # keep input dtype; promote lazily in FMA
    d = x.shape[-1]
    dh = d // 2

    if d % 128 == 0:
        # Lane-dense head dim: half-swap is a cheap XLU lane rotation.
        x_swap = pltpu.roll(x, shift=dh, axis=-1)
    else:
        # Narrow head dim (< 128 lanes): static-roll decomposition.
        x_swap = jnp.concatenate([x[..., dh:], x[..., :dh]], axis=-1)

    cos = cos_ref[...][None, :, None, :]        # (1, tT, 1, D), broadcast over H
    sin = sin_ref[...][None, :, None, :]

    # bf16 * f32 promotes to f32, matching the reference math; single
    # full-lane-width store straight into the output block.
    o_ref[...] = (x * cos + x_swap * sin).astype(o_ref.dtype)


def _choose_t_tile(T: int, H: int, D: int, itemsize: int,
                   target_bytes: int = 2 * 1024 * 1024) -> int:
    """Pick a T-tile so one x block is ~2 MiB (keeps double-buffered input +
    output + f32 temporaries comfortably inside scoped VMEM on all chips)."""
    row_bytes = max(1, H * D * itemsize)
    rows = max(1, target_bytes // row_bytes)
    if rows >= T:
        return T
    rows = max(8, (rows // 8) * 8)      # keep sublane-friendly multiples of 8
    return min(rows, T)


def rotary_forward(x_BTHD: jax.Array, cos: jax.Array, sin: jax.Array,
                   *, t_tile: int | None = None) -> jax.Array:
    """Applies rotary embedding. x_BTHD: (B, T, H, D); cos/sin: (T_max, D//2)."""
    B, T, H, D = x_BTHD.shape
    assert D % 2 == 0
    assert cos.shape[0] >= T, "rotary table shorter than sequence length"
    assert cos.shape[1] == D // 2

    # Full-width, sign-baked tables (tiny: T x D f32). Lane-dense DMA, and the
    # negation disappears from the inner loop.
    cos_full = jnp.concatenate([cos[:T], cos[:T]], axis=-1)        # (T, D)
    sin_signed = jnp.concatenate([sin[:T], -sin[:T]], axis=-1)     # (T, D)

    if t_tile is None:
        t_tile = _choose_t_tile(T, H, D, x_BTHD.dtype.itemsize)
    num_t = pl.cdiv(T, t_tile)

    itemsize = x_BTHD.dtype.itemsize
    cost = pl.CostEstimate(
        flops=3 * B * T * H * D,
        transcendentals=0,
        bytes_accessed=2 * B * T * H * D * itemsize + 2 * T * D * 4,
    )

    return pl.pallas_call(
        _rotary_kernel,
        out_shape=jax.ShapeDtypeStruct((B, T, H, D), x_BTHD.dtype),
        grid_spec=pltpu.PrefetchScalarGridSpec(
            num_scalar_prefetch=0,
            # T-tile is the outer axis so the table block index is constant
            # across the inner batch steps (no redundant table DMA).
            grid=(num_t, B),
            in_specs=[
                pl.BlockSpec((1, t_tile, H, D), lambda t, b: (b, t, 0, 0)),
                pl.BlockSpec((t_tile, D), lambda t, b: (t, 0)),
                pl.BlockSpec((t_tile, D), lambda t, b: (t, 0)),
            ],
            out_specs=pl.BlockSpec((1, t_tile, H, D), lambda t, b: (b, t, 0, 0)),
        ),
        compiler_params=pltpu.CompilerParams(
            dimension_semantics=("parallel", "parallel"),
            vmem_limit_bytes=32 * 1024 * 1024,
        ),
        cost_estimate=cost,
    )(x_BTHD, cos_full, sin_signed)


def rotary_reference(x_BTHD, cos, sin):
    """Pure-JAX reference mirroring the PyTorch forward."""
    T = x_BTHD.shape[-3]
    c = cos[None, :T, None, :]
    s = sin[None, :T, None, :]
    xf = x_BTHD.astype(jnp.float32)
    dh = xf.shape[-1] // 2
    x1, x2 = xf[..., :dh], xf[..., dh:]
    y1 = x1 * c + x2 * s
    y2 = x1 * (-s) + x2 * c
    return jnp.concatenate((y1, y2), axis=-1).astype(x_BTHD.dtype)


if __name__ == "__main__":
    B, T, H, D = 2, 8, 4, 32          # dim=32 -> dim//4=8, dim//2=16
    MAX_SEQ_LEN = 16

    cos, sin = make_rotary_tables(D, MAX_SEQ_LEN)

    key = jax.random.PRNGKey(0)
    x = jax.random.normal(key, (B, T, H, D), dtype=jnp.float32).astype(jnp.bfloat16)

    out = rotary_forward(x, cos, sin)
    out = jax.block_until_ready(out)

    ref = rotary_reference(x, cos, sin)
    assert out.shape == (B, T, H, D)
    assert out.dtype == x.dtype
    assert jnp.allclose(out.astype(jnp.float32), ref.astype(jnp.float32),
                        atol=1e-2, rtol=1e-2)

    print("KERNEL_OK")
</pallas_src>

<mosaic_0001>
module attributes {stable_mosaic.version = 11 : i64} {
  func.func @_rotary_kernel(%arg0: i32, %arg1: i32, %arg2: memref<1x8x4x32xbf16, #tpu.memory_space<vmem>>, %arg3: memref<8x32xf32, #tpu.memory_space<vmem>>, %arg4: memref<8x32xf32, #tpu.memory_space<vmem>>, %arg5: memref<1x8x4x32xbf16, #tpu.memory_space<vmem>>) attributes {dimension_semantics = [#tpu.dimension_semantics<parallel>, #tpu.dimension_semantics<parallel>], iteration_bounds = array<i64: 1, 2>, scalar_prefetch = 0 : i64, scratch_operands = 0 : i64, tpu.core_type = #tpu.core_type<tc>, window_params = [{transform_indices = @transform_0, window_bounds = array<i64: 1, 8, 4, 32>}, {transform_indices = @transform_1, window_bounds = array<i64: 8, 32>}, {transform_indices = @transform_2, window_bounds = array<i64: 8, 32>}, {transform_indices = @transform_3, window_bounds = array<i64: 1, 8, 4, 32>}]} {
    %c0 = arith.constant 0 : index
    %c0_0 = arith.constant 0 : index
    %c0_1 = arith.constant 0 : index
    %c0_2 = arith.constant 0 : index
    %0 = vector.load %arg2[%c0, %c0_0, %c0_1, %c0_2] : memref<1x8x4x32xbf16, #tpu.memory_space<vmem>>, vector<1x8x4x32xbf16>
    %1 = vector.extract_strided_slice %0 {offsets = [0, 0, 0, 16], sizes = [1, 8, 4, 16], strides = [1, 1, 1, 1]} : vector<1x8x4x32xbf16> to vector<1x8x4x16xbf16>
    %2 = vector.extract_strided_slice %0 {offsets = [0, 0, 0, 0], sizes = [1, 8, 4, 16], strides = [1, 1, 1, 1]} : vector<1x8x4x32xbf16> to vector<1x8x4x16xbf16>
    %3 = tpu.concatenate %1, %2 in 3 : vector<1x8x4x16xbf16>, vector<1x8x4x16xbf16> -> vector<1x8x4x32xbf16>
    %c0_3 = arith.constant 0 : index
    %c0_4 = arith.constant 0 : index
    %4 = vector.load %arg3[%c0_3, %c0_4] : memref<8x32xf32, #tpu.memory_space<vmem>>, vector<8x32xf32>
    %5 = vector.shape_cast %4 : vector<8x32xf32> to vector<1x8x1x32xf32>
    %c0_5 = arith.constant 0 : index
    %c0_6 = arith.constant 0 : index
    %6 = vector.load %arg4[%c0_5, %c0_6] : memref<8x32xf32, #tpu.memory_space<vmem>>, vector<8x32xf32>
    %7 = vector.shape_cast %6 : vector<8x32xf32> to vector<1x8x1x32xf32>
    %8 = arith.extf %0 : vector<1x8x4x32xbf16> to vector<1x8x4x32xf32>
    %9 = vector.broadcast %5 : vector<1x8x1x32xf32> to vector<1x8x4x32xf32>
    %10 = arith.mulf %8, %9 : vector<1x8x4x32xf32>
    %11 = arith.extf %3 : vector<1x8x4x32xbf16> to vector<1x8x4x32xf32>
    %12 = vector.broadcast %7 : vector<1x8x1x32xf32> to vector<1x8x4x32xf32>
    %13 = arith.mulf %11, %12 : vector<1x8x4x32xf32>
    %14 = arith.addf %10, %13 : vector<1x8x4x32xf32>
    %15 = arith.truncf %14 : vector<1x8x4x32xf32> to vector<1x8x4x32xbf16>
    %c0_7 = arith.constant 0 : index
    %c0_8 = arith.constant 0 : index
    %c0_9 = arith.constant 0 : index
    %c0_10 = arith.constant 0 : index
    %16 = vector.load %arg5[%c0_7, %c0_8, %c0_9, %c0_10] : memref<1x8x4x32xbf16, #tpu.memory_space<vmem>>, vector<1x8x4x32xbf16>
    tpu.vector_store %arg5[%c0_7, %c0_8, %c0_9, %c0_10], %15 {strides = array<i32>} : memref<1x8x4x32xbf16, #tpu.memory_space<vmem>>, vector<1x8x4x32xbf16>,
    return
  }
  func.func @transform_0(%arg0: i32, %arg1: i32) -> (i32, i32, i32, i32) {
    %c0_i32 = arith.constant 0 : i32
    %c0_i32_0 = arith.constant 0 : i32
    %c0_i32_1 = arith.constant 0 : i32
    return %arg1, %arg0, %c0_i32, %c0_i32_0 : i32, i32, i32, i32
  }
  func.func @transform_1(%arg0: i32, %arg1: i32) -> (i32, i32) {
    %c0_i32 = arith.constant 0 : i32
    %c0_i32_0 = arith.constant 0 : i32
    return %arg0, %c0_i32 : i32, i32
  }
  func.func @transform_2(%arg0: i32, %arg1: i32) -> (i32, i32) {
    %c0_i32 = arith.constant 0 : i32
    %c0_i32_0 = arith.constant 0 : i32
    return %arg0, %c0_i32 : i32, i32
  }
  func.func @transform_3(%arg0: i32, %arg1: i32) -> (i32, i32, i32, i32) {
    %c0_i32 = arith.constant 0 : i32
    %c0_i32_0 = arith.constant 0 : i32
    %c0_i32_1 = arith.constant 0 : i32
    return %arg1, %arg0, %c0_i32, %c0_i32_0 : i32, i32, i32, i32
  }
}

</mosaic_0001>

<bundles_post_ra>
// kernel: tpu_custom_call.1
= control target key start
LH: loop header
LB: loop body
LE: loop exit
PB: predicated region body
PF: predicated region fallthrough
CT: control target
= control target key end

     0   :  { %8 = vsyncpa [#allocation3], 0  ;;  %s1426_s0 = inlined_call_operand.hbm [shape: bf16[2,8,4,32], index: 0, kind: input, shape index: {}]   ;;  %s1427_s1 = inlined_call_operand.hbm [shape: f32[8,32], index: 1, kind: input, shape index: {}]   ;;  %s1428_s2 = inlined_call_operand.hbm [shape: f32[8,32], index: 2, kind: input, shape index: {}]   ;;  %s1429_s3 = inlined_call_operand.hbm [shape: bf16[2,8,4,32], index: 3, kind: output, shape index: {}]  }
   0x1   :  { %10 = vsyncpa [#allocation3 + $0x1], 0 }
   0x2   :  { %11 = vsyncpa [#allocation6], 0 }
   0x3   :  { %12 = vsyncpa [#allocation4], 0 }
   0x4   :  { %14 = vsyncpa [#allocation4 + $0x1], 0  ;;  %s1069_s12 = smov 0   ;;  %s1071_s13 = smov 0  }
   0x5   :  { %s1073_s14 = smov 0   ;;  %s1075_s15 = smov 0  }
   0x6   :  { %s1077_s16 = smov 0   ;;  %s1079_s17 = smov 0  }
   0x7 LB: > { %s750_s18 = sadd.s32 4294967295, %s1035_s17   ;;  %s751_s19 = sadd.s32 4294967294, %s1035_s17   ;;  %s1035_s17 = sphi %s1079_s17, %s20_s17   ;;  %s1031_s16 = sphi %s1077_s16, %s1455_s16   ;;  %s1027_s15 = sphi %s1075_s15, %s1454_s15   ;;  %s1023_s14 = sphi %s1073_s14, %s1453_s14   ;;  %s1019_s13 = sphi %s1071_s13, %s1452_s13   ;;  %s1015_s12 = sphi %s1069_s12, %s1451_s12  }
   0x8   : > { %s41_s20 = sadd.s32 1, %s1023_s14  ;;  %p48_p0 = scmp.ne.s32.totalorder %s1023_s14, %s1019_s13 }
   0x9   : > { %p49_p1 = scmp.eq.s32.totalorder %s1035_s17, 0  ;;  %p54_p2 = scmp.ne.s32.totalorder %s1019_s13, %s1015_s12 }
   0xa   : > { %p1107_p3 = scmp.eq.s32.totalorder %s750_s18, 0  ;;  %p132_p4 = scmp.eq.s32.totalorder %s750_s18, 1 }
   0xb   : > { %p1111_p5 = por %p49_p1, %p48_p0  ;;  %p138_p6 = scmp.eq.s32.totalorder %s751_s19, 1 }
   0xc   : > { %s1436_s21 = scalar_select %p1107_p3, 1, 0 }
   0xd   : > { %p1117_p7 = por %p1107_p3, %p54_p2  ;;  %p1121_p8 = por %p132_p4, %p48_p0 }
   0xe   : > { %p1125_p9 = por %p138_p6, %p54_p2  ;;  %p752_p10 = scmp.ge.s32.totalorder %s1035_s17, 1 }
   0xf   : > { %s1438_s23 = scalar_select %p1117_p7, 1, 0 }
  0x10   : > { %s1439_s24 = scalar_select %p1121_p8, 1, 0 }
  0x11   : > { %s1440_s25 = scalar_select %p1125_p9, 1, 0 }
  0x12   : > { %p145_p11 = scmp.lt.s32.totalorder %s1035_s17, 3  ;;  %s1037_s27 = smov [#allocation5]  }
  0x13   : > { %s160_s28 = sshll.u32 %s1037_s27, 4  ;;  %p800_p1 = scmp.lt.s32.totalorder %s1035_s17, 2  ;;  %s161_s28 = int_to_ptr.vmem [resolvable:$true] %s160_s28 }
  0x14   : > { %p1132_p13 = pnand %p752_p10, %p145_p11  ;;  %s1038_s30 = smov [#allocation7]  }
  0x15   : > { %p1141_p4 = pnand %p800_p1, %p1111_p5  ;;  %s173_s4 = sshll.u32 %s1038_s30, 4  ;;  %s1151_s4 = int_to_ptr.vmem [resolvable:$true] %s173_s4 }
  0x16   : > { %s1441_s26 = scalar_select %p1132_p13, 1, 0 }
  0x17   : > { %p783_p0 = pneg %p1132_p13  ;;  %s863_s8 = scalar_lea.hbm %s1427_s1, 128 }
  0x18   : > { %s1442_s29 = scalar_select %p1141_p4, 1, 0 }
  0x19   : > { %p1147_p2 = pnand %p783_p0, %p1107_p3  ;;  %p864_p5 = scmp.ne.s32.totalorder %s1427_s1, %s863_s8 }
  0x1a   : > { %p870_p1 = scmp.lt.u32.totalorder %s863_s8, %s1427_s1 }
  0x1b   : > { %p865_p6 = pneg %p1147_p2 }
  0x1d   : > { %p866_p10 = pnand %p865_p6, %p864_p5 }
  0x1f   : > { %p867_p11 = pneg %p866_p10 }
  0x21   : > { %p872_p0 = pnand %p870_p1, %p867_p11 }
  0x23   : > { %875 = shalt.err (!%p872_p0)
}
  0x24   : > { %s876_s19 = scalar_lea.vmem %s161_s28, 128  ;;  %p884_p3 = scmp.lt.s32.totalorder %s161_s28, %s161_s28 }
  0x25   : > { %p877_p12 = scmp.ne.s32.totalorder %s161_s28, %s876_s19  ;;  %p885_p7 = scmp.lt.s32.totalorder %s876_s19, %s876_s19 }
  0x27   : > { %p879_p9 = pnand %p877_p12, %p865_p6  ;;  %p886_p13 = por %p885_p7, %p884_p3 }
  0x29   : > { %p880_p8 = pneg %p879_p9 }
  0x2b   : > { %p887_p4 = pnand %p886_p13, %p880_p8 }
  0x2d   : > { %890 = shalt.err (!%p887_p4)
}
  0x2e   : > { %786 = dma.hbm_to_vmem [thread:$0]  (!%p1147_p2), %s1427_s1, 128, %s161_s28, [#allocation6]  }
  0x2f   : > { %s891_s7 = scalar_lea.hbm %s1428_s2, 128 }
  0x30   : > { %p892_p9 = scmp.ne.s32.totalorder %s1428_s2, %s891_s7  ;;  %p898_p8 = scmp.lt.u32.totalorder %s891_s7, %s1428_s2 }
  0x32   : > { %p894_p3 = pnand %p892_p9, %p865_p6 }
  0x34   : > { %p895_p7 = pneg %p894_p3 }
  0x36   : > { %p900_p12 = pnand %p898_p8, %p895_p7 }
  0x38   : > { %903 = shalt.err (!%p900_p12)
}
  0x39   : > { %s904_s28 = scalar_lea.vmem %s1151_s4, 128  ;;  %p912_p10 = scmp.lt.s32.totalorder %s1151_s4, %s1151_s4 }
  0x3a   : > { %p905_p13 = scmp.ne.s32.totalorder %s1151_s4, %s904_s28  ;;  %p913_p11 = scmp.lt.s32.totalorder %s904_s28, %s904_s28 }
  0x3c   : > { %p907_p4 = pnand %p905_p13, %p865_p6  ;;  %p914_p1 = por %p913_p11, %p912_p10 }
  0x3e   : > { %p908_p5 = pneg %p907_p4 }
  0x40   : > { %p915_p0 = pnand %p914_p1, %p908_p5 }
  0x42   : > { %918 = shalt.err (!%p915_p0)
}
  0x43   : > { %789 = dma.hbm_to_vmem [thread:$0]  (!%p1147_p2), %s1428_s2, 128, %s1151_s4, [#allocation6]  }
  0x44   : > { %s29_s22 = sadd.s32 1, %s1031_s16  ;;  %s184_s27 = sand.u32 1, %s1023_s14  }
  0x45   : > { %p30_p6 = scmp.ge.s32.totalorder %s29_s22, 2  ;;  %s756_s30 = sshll.u32 %s184_s27, 4 }
  0x46   : > { %s769_s6 = sshll.u32 %s1031_s16, 8  ;;  %s188_s4 = scalar_lea.vmem [#allocation2], %s756_s30 }
  0x47   : > { %s1457_s22 = smov (%p30_p6, %s29_s22), 0  ;;  %s1208_s8 = scalar_lea.hbm %s1426_s0, %s769_s6 }
  0x48   : > { %s36_s9 = ssub.s32 %s1031_s16, %s1457_s22  ;;  %s197_s10 = sshll.u32 %s188_s4, 4  ;;  %s1212_s10 = int_to_ptr.vmem [resolvable:$true] %s197_s10 }
  0x49   : > { %p39_p2 = scmp.eq.s32.totalorder %s36_s9, 0  ;;  %s1219_s28 = scalar_lea.sflag [#allocation3], %s184_s27 }
  0x4a   : > { %s919_s18 = scalar_lea.hbm %s1208_s8, 256  ;;  %p1444_p3 = scmp.ne.s32.totalorder %s1442_s29, 0 }
  0x4b   : > { %s1217_s11 = scalar_select %p39_p2, %s1023_s14, %s41_s20  }
  0x4c   : > { %p920_p9 = scmp.ne.s32.totalorder %s1208_s8, %s919_s18  ;;  %p921_p7 = pneg %p1444_p3 }
  0x4d   : > { %s924_s30 = scalar_lea.hbm %s1426_s0, 512  ;;  %p925_p13 = scmp.lt.u32.totalorder %s1208_s8, %s1426_s0 }
  0x4e   : > { %p922_p8 = pnand %p921_p7, %p920_p9  ;;  %p926_p4 = scmp.lt.u32.totalorder %s924_s30, %s919_s18 }
  0x4f   : > { %p928_p10 = scmp.lt.u32.totalorder %s919_s18, %s1208_s8 }
  0x50   : > { %p923_p12 = pneg %p922_p8  ;;  %p927_p5 = por %p926_p4, %p925_p13 }
  0x52   : > { %p929_p11 = por %p928_p10, %p927_p5 }
  0x54   : > { %p930_p1 = pnand %p929_p11, %p923_p12 }
  0x56   : > { %933 = shalt.err (!%p930_p1)
}
  0x57   : > { %s934_s20 = scalar_lea.vmem %s1212_s10, 256  ;;  %s1039_s27 = smov [#allocation2]  }
  0x58   : > { %p935_p0 = scmp.ne.s32.totalorder %s1212_s10, %s934_s20  ;;  %s939_s9 = sshll.u32 %s1039_s27, 4  ;;  %s940_s9 = int_to_ptr.vmem [resolvable:$false] %s939_s9 }
  0x59   : > { %s941_s4 = scalar_lea.vmem %s940_s9, 512  ;;  %p942_p9 = scmp.lt.s32.totalorder %s1212_s10, %s940_s9 }
  0x5a   : > { %p937_p6 = pnand %p935_p0, %p921_p7  ;;  %p943_p8 = scmp.lt.s32.totalorder %s941_s4, %s934_s20 }
  0x5c   : > { %p938_p2 = pneg %p937_p6  ;;  %p944_p13 = por %p943_p8, %p942_p9 }
  0x5e   : > { %p945_p4 = pnand %p944_p13, %p938_p2 }
  0x60   : > { %948 = shalt.err (!%p945_p4)
}
  0x61   : > { %s1040_s18 = smov 32   ;;  %s1041_s19 = smov 2  }
  0x62   : > { %793 = dma.hbm_to_vmem [thread:$0]  (!%p1444_p3), %s1208_s8, 256, %s1212_s10, %s1219_s28, %s1040_s18, %s1040_s18, %s1041_s19  }
  0x63   : > { %p1445_p7 = scmp.ne.s32.totalorder %s1441_s26, 0 }
  0x64   : > { %s1250_s6 = sand.u32 (!%p1445_p7), 1, %s1019_s13   ;;  %p1446_p12 = scmp.ne.s32.totalorder (!%p1445_p7), %s1438_s23, 0 }
  0x65   : > { %209 = sbr.rel (%p1445_p7) target bundleno = 288 (0x120), region = 32  ;;  %s760_s30 = sshll.u32 (!%p1445_p7), %s1250_s6, 4 }
  0x66   : > { %s212_s5 = scalar_lea.sflag (!%p1445_p7), [#allocation3], %s1250_s6  ;;  %s1256_s7 = scalar_lea.vmem (!%p1445_p7), [#allocation2], %s760_s30 }
  0x6c   : > { %1002 = dma.done.wait (%p1446_p12), %s212_s5, 256  }
  0x6d   : > { %1004 = vsyncadd (%p1446_p12), %s212_s5, 4294967040  ;;  %p1447_p3 = scmp.ne.s32.totalorder %s1436_s21, 0 }
  0x6f   : > { %1006 = dma.done.wait (%p1447_p3), [#allocation6], 256  }
  0x70   : > { %1008 = vsyncadd (%p1447_p3), [#allocation6], 4294967040  ;;  %v267_v0 = vlaneseq  ;;  %v1042_v1 = vmov 1983009808   ;;  %v1043_v4 = vmov 1966171168  }
  0x71   : > { %v265_v2 = vunpack.c.l.s4 %v1042_v1  ;;  %v389_v5 = vunpack.c.l.s4 %v1043_v4  ;;  %v250_v10 = vld [vmem:[%s1256_s7 + $0x4] sm:$0x3]  ;;  %v248_v12 = vld [vmem:[%s1256_s7] sm:$0x3]  ;;  %v251_v16 = vld [vmem:[%s1256_s7 + $0x6] sm:$0x3] }
  0x72   : > { %v268_v3 = vshrl.u32 %v267_v0, 7  ;;  %v385_v11 = vld [vmem:[#allocation5] sm:$0xff]  ;;  %s1044_s21 = smov 112   ;;  %v487_v20 = vunpack.c.l.bf16 %v248_v12  ;;  %v253_v23 = vld [vmem:[%s1256_s7 + $0xa] sm:$0x3]  ;;  %v489_v25 = vunpack.c.l.bf16 %v250_v10  ;;  %v490_v39 = vunpack.c.l.bf16 %v251_v16  ;;  %s1045_s23 = smov 16  }
  0x73   : > { %v266_v6 = vunpack.c.0.s8 %v265_v2  ;;  %v390_v7 = vunpack.c.0.s8 %v389_v5  ;;  %v249_v17 = vld [vmem:[%s1256_s7 + $0x2] sm:$0x3]  ;;  %v252_v27 = vld [vmem:[%s1256_s7 + $0x8] sm:$0x3]  ;;  %v387_v29 = vcombine.high %v385_v11, %v385_v11  ;;  %v255_v35 = vld [vmem:[%s1256_s7 + $0xe] sm:$0x3]  ;;  %v492_v51 = vunpack.c.l.bf16 %v253_v23 }
  0x74   : > { %v1273_v15 = vsub.s32 0, %v268_v3  ;;  %v488_v33 = vunpack.c.l.bf16 %v249_v17  ;;  %v254_v38 = vld [vmem:[%s1256_s7 + $0xc] sm:$0x3]  ;;  %v491_v48 = vunpack.c.l.bf16 %v252_v27  ;;  %v494_v54 = vunpack.c.l.bf16 %v255_v35  ;;  %s1341_s26 = scalar_lea.vmem [#allocation8], %s760_s30  ;;  %s770_s29 = sshll.u32 %s1027_s15, 8 }
  0x75   : > { %v269_v8 = vsub.s32 %v266_v6, %v268_v3  ;;  %v1266_v9 = vsub.s32 %v390_v7, %v268_v3  ;;  %v493_v56 = vunpack.c.l.bf16 %v254_v38  ;;  %v436_v3 = vld [vmem:[#allocation7] sm:$0xff]  ;;  %vm352_vm0 = vcmask 130048   ;;  %s640_s8 = sshll.u32 %s1341_s26, 4  ;;  %s1371_s20 = scalar_lea.hbm %s1429_s3, %s770_s29  ;;  %s1373_s8 = int_to_ptr.vmem [resolvable:$true] %s640_s8 }
  0x76   : > { %vm615_vm1 = vcmask 254976   ;;  %s625_s15 = scalar_lea.sflag [#allocation4], %s1250_s6  ;;  %s949_s27 = scalar_lea.vmem %s1373_s8, 256 }
  0x77   : > { %v1270_v13 = vrot.slane %v250_v10, %v269_v8  ;;  %v394_v14 = vrot.slane %v385_v11, %v1266_v9  ;;  %v270_v18 = vrot.slane %v248_v12, %v269_v8  ;;  %v291_v21 = vrot.slane %v251_v16, %v269_v8  ;;  %p950_p5 = scmp.ne.s32.totalorder %s1373_s8, %s949_s27  ;;  %p1448_p10 = scmp.ne.s32.totalorder %s1439_s24, 0 }
  0x78   : > { %v277_v22 = vrot.slane %v249_v17, %v269_v8  ;;  %v305_v32 = vrot.slane %v253_v23, %v269_v8  ;;  %v298_v34 = vrot.slane %v252_v27, %v269_v8  ;;  %v319_v42 = vrot.slane %v255_v35, %v269_v8  ;;  %s1046_s9 = smov [#allocation8]  }
  0x79   : > { %v410_v19 = vrot.slane %v394_v14, %v1266_v9  ;;  %324 = vrot.lane.b32.xlu1 %v1270_v13, %s1044_s21  ;;  %320 = vrot.lane.b32.xlu0 %v270_v18, %s1044_s21  ;;  %v402_v28 = vcombine.high %v394_v14, %v394_v14  ;;  %v401_v43 = vrot.slane %v387_v29, %v1266_v9  ;;  %p951_p11 = pnand %p950_p5, %p1448_p10  ;;  %s953_s4 = sshll.u32 %s1046_s9, 4  ;;  %s954_s4 = int_to_ptr.vmem [resolvable:$false] %s953_s4 }
  0x7a   : > { %v312_v44 = vrot.slane %v254_v38, %v269_v8  ;;  %v445_v5 = vrot.slane %v436_v3, %v1266_v9  ;;  %v438_v10 = vcombine.high %v436_v3, %v436_v3  ;;  %s955_s18 = scalar_lea.vmem %s954_s4, 512  ;;  %p956_p0 = scmp.lt.s32.totalorder %s1373_s8, %s954_s4 }
  0x7b   : > { %v432_v24 = vcombine.high %v410_v19, %v410_v19  ;;  %v498_v26 = vrot.slane %v410_v19, %v1273_v15  ;;  %v424_v36 = vrot.slane %v402_v28, %v1266_v9  ;;  %v403_v47 = vcombine.high %v401_v43, %v401_v43  ;;  %p952_p1 = pneg %p951_p11  ;;  %p957_p6 = scmp.lt.s32.totalorder %s955_s18, %s949_s27 }
  0x7c   : > { %v417_v50 = vrot.slane %v401_v43, %v1266_v9  ;;  %v453_v8 = vcombine.high %v445_v5, %v445_v5  ;;  %v461_v17 = vrot.slane %v445_v5, %v1266_v9 }
  0x7d   : > { %v506_v30 = vrot.slane %v432_v24, %v1273_v15  ;;  %v1285_v31 = vmul.f32 %v498_v26, %v487_v20  ;;  %326 = vrot.lane.b32.xlu1 %v291_v21, %s1044_s21  ;;  %322 = vrot.lane.b32.xlu0 %v277_v22, %s1044_s21  ;;  %v502_v40 = vrot.slane %v424_v36, %v1273_v15  ;;  %p958_p2 = por %p957_p6, %p956_p0 }
  0x7e   : > { %v434_v41 = vcombine.high %v424_v36, %v424_v36  ;;  %v431_v52 = vrot.slane %v403_v47, %v1266_v9  ;;  %v514_v53 = vrot.slane %v417_v50, %v1273_v15  ;;  %v433_v59 = vcombine.high %v417_v50, %v417_v50 }
  0x7f   : > { %v1291_v37 = vmul.f32 %v506_v30, %v489_v25  ;;  %v1298_v45 = vmul.f32 %v502_v40, %v488_v33  ;;  %v475_v14 = vrot.slane %v453_v8, %v1266_v9  ;;  %v554_v23 = vrot.slane %v461_v17, %v1273_v15  ;;  %p959_p9 = pnand %p958_p2, %p952_p1 }
  0x80   : > { %v510_v46 = vrot.slane %v434_v41, %v1273_v15  ;;  %v518_v55 = vrot.slane %v431_v52, %v1273_v15  ;;  %v1309_v57 = vmul.f32 %v514_v53, %v491_v48  ;;  %v435_v58 = vcombine.high %v431_v52, %v431_v52 }
  0x81   : > { %330 = vrot.lane.b32.xlu1 %v305_v32, %s1044_s21  ;;  %328 = vrot.lane.b32.xlu0 %v298_v34, %s1044_s21  ;;  %v522_v62 = vrot.slane %v433_v59, %v1273_v15  ;;  %v485_v20 = vcombine.high %v475_v14, %v475_v14  ;;  %v483_v25 = vcombine.high %v461_v17, %v461_v17 }
  0x82   : > { %v1301_v49 = vmul.f32 %v510_v46, %v490_v39  ;;  %v1311_v60 = vmul.f32 %v518_v55, %v492_v51  ;;  %v526_v61 = vrot.slane %v435_v58, %v1273_v15 }
  0x83   : > { %v1317_v0 = vmul.f32 %v522_v62, %v493_v56  ;;  %v562_v38 = vrot.slane %v483_v25, %v1273_v15 }
  0x84   : > { %v1315_v63 = vmul.f32 %v526_v61, %v494_v54 }
  0x85   : > { %334 = vrot.lane.b32.xlu1 %v319_v42, %s1044_s21  ;;  %332 = vrot.lane.b32.xlu0 %v312_v44, %s1044_s21 }
  0x89   : > { %338 = vrot.lane.b32.xlu1 %v277_v22, %s1045_s23  ;;  %336 = vrot.lane.b32.xlu0 %v270_v18, %s1045_s23  ;;  %v558_v18 = vrot.slane %v475_v14, %v1273_v15 }
  0x8d   : > { %342 = vrot.lane.b32.xlu1 %v291_v21, %s1045_s23  ;;  %340 = vrot.lane.b32.xlu0 %v1270_v13, %s1045_s23  ;;  %v452_v13 = vrot.slane %v438_v10, %v1266_v9 }
  0x8f   : > { %v454_v21 = vcombine.high %v452_v13, %v452_v13  ;;  %v468_v29 = vrot.slane %v452_v13, %v1266_v9 }
  0x91   : > { %346 = vrot.lane.b32.xlu1 %v305_v32, %s1045_s23  ;;  %344 = vrot.lane.b32.xlu0 %v298_v34, %s1045_s23  ;;  %v566_v32 = vrot.slane %v485_v20, %v1273_v15  ;;  %v482_v34 = vrot.slane %v454_v21, %v1266_v9  ;;  %v570_v46 = vrot.slane %v468_v29, %v1273_v15 }
  0x92   : > { %v484_v55 = vcombine.high %v468_v29, %v468_v29 }
  0x93   : > { %v574_v48 = vrot.slane %v482_v34, %v1273_v15  ;;  %v486_v51 = vcombine.high %v482_v34, %v482_v34 }
  0x95   : > { %350 = vrot.lane.b32.xlu1 %v319_v42, %s1045_s23  ;;  %348 = vrot.lane.b32.xlu0 %v312_v44, %s1045_s23 }
  0xeb   : > { %v325_v1 = vpop.permute.xlu1 %324  ;;  %v321_v2 = vpop.permute.xlu0 %320 }
  0xef   : > { %v327_v4 = vpop.permute.xlu1 %326  ;;  %v323_v6 = vpop.permute.xlu0 %322 }
  0xf3   : > { %v331_v7 = vpop.permute.xlu1 %330  ;;  %v329_v11 = vpop.permute.xlu0 %328 }
  0xf7   : > { %v335_v12 = vpop.permute.xlu1 %334  ;;  %v333_v16 = vpop.permute.xlu0 %332 }
  0xfb   : > { %v339_v19 = vpop.permute.xlu1 %338  ;;  %v337_v24 = vpop.permute.xlu0 %336 }
  0xfc   : > { %v359_v22 = vsel %vm352_vm0, %v323_v6, %v339_v19  ;;  %v355_v27 = vsel %vm352_vm0, %v321_v2, %v337_v24  ;;  %v582_v2 = vrot.slane %v486_v51, %v1273_v15  ;;  %v578_v6 = vrot.slane %v484_v55, %v1273_v15 }
  0xfd   : > { %v544_v26 = vunpack.c.l.bf16 %v359_v22  ;;  %v543_v28 = vunpack.c.l.bf16 %v355_v27 }
  0xff   : > { %v592_v30 = vmul.f32 %v558_v18, %v544_v26  ;;  %v343_v33 = vpop.permute.xlu1 %342  ;;  %v591_v35 = vmul.f32 %v554_v23, %v543_v28  ;;  %v341_v39 = vpop.permute.xlu0 %340 }
 0x100   : > { %v367_v36 = vsel %vm352_vm0, %v327_v4, %v343_v33  ;;  %v363_v42 = vsel %vm352_vm0, %v325_v1, %v341_v39 }
 0x101   : > { %v600_v40 = vadd.f32 %v592_v30, %v1298_v45  ;;  %v546_v41 = vunpack.c.l.bf16 %v367_v36  ;;  %v599_v43 = vadd.f32 %v591_v35, %v1285_v31  ;;  %v545_v44 = vunpack.c.l.bf16 %v363_v42 }
 0x103   : > { %v608_v47 = vpack.c.bf16 %v600_v40, %v600_v40  ;;  %v594_v9 = vmul.f32 %v566_v32, %v546_v41  ;;  %v347_v50 = vpop.permute.xlu1 %346  ;;  %v607_v52 = vpack.c.bf16 %v599_v43, %v599_v43  ;;  %v593_v53 = vmul.f32 %v562_v38, %v545_v44  ;;  %v345_v54 = vpop.permute.xlu0 %344 }
 0x104   : > { %v375_v45 = vsel %vm352_vm0, %v331_v7, %v347_v50  ;;  %v371_v58 = vsel %vm352_vm0, %v329_v11, %v345_v54 }
 0x105   : > { %617 = vst.msk [vmem:[%s1341_s26 + $0x2] sm:$0x3] %vm615_vm1, %v608_v47  ;;  %v602_v31 = vadd.f32 %v594_v9, %v1301_v49  ;;  %v548_v56 = vunpack.c.l.bf16 %v375_v45  ;;  %616 = vst.msk [vmem:[%s1341_s26] sm:$0x3] %vm615_vm1, %v607_v52  ;;  %v601_v59 = vadd.f32 %v593_v53, %v1291_v37  ;;  %v547_v61 = vunpack.c.l.bf16 %v371_v58 }
 0x107   : > { %v610_v62 = vpack.c.bf16 %v602_v31, %v602_v31  ;;  %v596_v1 = vmul.f32 %v574_v48, %v548_v56  ;;  %v351_v3 = vpop.permute.xlu1 %350  ;;  %v609_v4 = vpack.c.bf16 %v601_v59, %v601_v59  ;;  %v595_v5 = vmul.f32 %v570_v46, %v547_v61  ;;  %v349_v7 = vpop.permute.xlu0 %348 }
 0x108   : > { %v383_v49 = vsel %vm352_vm0, %v335_v12, %v351_v3  ;;  %v379_v10 = vsel %vm352_vm0, %v333_v16, %v349_v7 }
 0x109   : > { %619 = vst.msk [vmem:[%s1341_s26 + $0x6] sm:$0x3] %vm615_vm1, %v610_v62  ;;  %v604_v37 = vadd.f32 %v596_v1, %v1311_v60  ;;  %v550_v8 = vunpack.c.l.bf16 %v383_v49  ;;  %618 = vst.msk [vmem:[%s1341_s26 + $0x4] sm:$0x3] %vm615_vm1, %v609_v4  ;;  %v603_v11 = vadd.f32 %v595_v5, %v1309_v57  ;;  %v549_v14 = vunpack.c.l.bf16 %v379_v10 }
 0x10b   : > { %v612_v12 = vpack.c.bf16 %v604_v37, %v604_v37  ;;  %v598_v13 = vmul.f32 %v582_v2, %v550_v8  ;;  %v611_v15 = vpack.c.bf16 %v603_v11, %v603_v11  ;;  %v597_v17 = vmul.f32 %v578_v6, %v549_v14 }
 0x10d   : > { %621 = vst.msk [vmem:[%s1341_s26 + $0xa] sm:$0x3] %vm615_vm1, %v612_v12  ;;  %v606_v60 = vadd.f32 %v598_v13, %v1315_v63  ;;  %620 = vst.msk [vmem:[%s1341_s26 + $0x8] sm:$0x3] %vm615_vm1, %v611_v15  ;;  %v605_v16 = vadd.f32 %v597_v17, %v1317_v0 }
 0x10f   : > { %v614_v57 = vpack.c.bf16 %v606_v60, %v606_v60  ;;  %v613_v18 = vpack.c.bf16 %v605_v16, %v605_v16 }
 0x111   : > { %623 = vst.msk [vmem:[%s1341_s26 + $0xe] sm:$0x3] %vm615_vm1, %v614_v57  ;;  %622 = vst.msk [vmem:[%s1341_s26 + $0xc] sm:$0x3] %vm615_vm1, %v613_v18 }
 0x112   : > { %962 = shalt.err (!%p959_p9)
}
 0x113   : > { %s963_s19 = scalar_lea.hbm %s1371_s20, 256  ;;  %s967_s7 = scalar_lea.hbm %s1429_s3, 512 }
 0x114   : > { %p964_p8 = scmp.ne.s32.totalorder %s1371_s20, %s963_s19  ;;  %p968_p7 = scmp.lt.u32.totalorder %s1371_s20, %s1429_s3 }
 0x115   : > { %p969_p12 = scmp.lt.u32.totalorder %s967_s7, %s963_s19  ;;  %p971_p5 = scmp.lt.u32.totalorder %s963_s19, %s1371_s20 }
 0x116   : > { %p965_p13 = pnand %p964_p8, %p1448_p10 }
 0x117   : > { %p970_p3 = por %p969_p12, %p968_p7 }
 0x118   : > { %p966_p4 = pneg %p965_p13 }
 0x119   : > { %p972_p11 = por %p971_p5, %p970_p3 }
 0x11b   : > { %p973_p1 = pnand %p972_p11, %p966_p4 }
 0x11d   : > { %976 = shalt.err (!%p973_p1)
}
 0x11e   : > { %s1047_s26 = smov 32   ;;  %s1048_s29 = smov 2  }
 0x11f   : > { %781 = dma.vmem_to_hbm [thread:$0]  (%p1448_p10), %s1373_s8, 256, %s1371_s20, %s625_s15, %s1047_s26, %s1047_s26, %s1048_s29  }
 0x120 PF: > { %s655_s10 = sand.u32 1, %s1015_s12   ;;  %p1449_p0 = scmp.ne.s32.totalorder %s1440_s25, 0 }
 0x121   : > { %p1450_p6 = scmp.ge.s32.totalorder %s1035_s17, 2  ;;  %s656_s28 = scalar_lea.sflag [#allocation4], %s655_s10 }
 0x123   : > { %p795_p2 = pnand %p1450_p6, %p1449_p0 }
 0x125   : > { %1010 = dma.done.wait (!%p795_p2), %s656_s28, 256  }
 0x126   : > { %1012 = vsyncadd (!%p795_p2), %s656_s28, 4294967040  ;;  %s20_s17 = sadd.s32 1, %s1035_s17   ;;  %s1451_s12 = smov %s1019_s13 }
 0x127   : > { %p17_p9 = scmp.ge.s32.totalorder %s20_s17, 4   ;;  %s1452_s13 = smov %s1023_s14 }
 0x128   : > { %s1453_s14 = smov %s1217_s11  ;;  %s1454_s15 = smov %s1031_s16 }
 0x129   : > { %s1455_s16 = smov %s1457_s22  ;;  %19 = sbr.rel (!%p17_p9) target bundleno = 7 (0x7), region = 87 }
 0x130   :  { %661 = vsyncpa [#allocation3], 1 }
 0x131   :  { %663 = vsyncpa [#allocation3 + $0x1], 1 }
 0x132   :  { %664 = vsyncpa [#allocation6], 1 }
 0x133   :  { %665 = vsyncpa [#allocation4], 1 }
 0x134   :  { %667 = vsyncpa [#allocation4 + $0x1], 1 }

</bundles_post_ra>
